<compile_context>
chip_gen: v7x
topology: tpu7x:2x2x1
jax: 0.10.0
libtpu: 0.0.40
codegen_flags: <defaults>
</compile_context>

<pallas_src>
import numpy as np
import jax
import jax.numpy as jnp
from jax.experimental import pallas as pl
from jax.experimental.pallas import tpu as pltpu


def spiral_enblock(x, indices, weight, bias, down_transform_dense,
                   *, batch_tile=None, n_in_tile=None):
    """x: (B, N_in, C_in) f32; indices: (N_in, S) int32; weight: (C_out, S*C_in);
       bias: (C_out,); down_transform_dense: (N_out, N_in)."""
    B, N_in, C_in = x.shape
    _, S = indices.shape
    SC = S * C_in
    C_out = weight.shape[0]
    N_out = down_transform_dense.shape[0]

    # ---- tiling choices --------------------------------------------------
    if batch_tile is None:
        batch_tile = next(bt for bt in (8, 4, 2, 1) if B % bt == 0)
    assert B % batch_tile == 0

    if n_in_tile is None:
        if N_in <= 512:
            n_in_tile = N_in
        else:
            n_in_tile = N_in
            for t in range(512, 0, -16):
                if N_in % t == 0:
                    n_in_tile = t
                    break
    assert N_in % n_in_tile == 0
    # bf16 second-minor tiling: the N_in tile must be a multiple of 16 unless it is the full dim.
    assert n_in_tile == N_in or n_in_tile % 16 == 0

    num_g = B // batch_tile
    num_k = N_in // n_in_tile

    # ---- JAX glue: spiral gather + operand prep --------------------------
    # TODO(synk): fuse the index_select gather into the kernel (in-kernel dynamic gather /
    # DMA gather from a VMEM-resident x tile) so the S*-inflated gathered tensor is never
    # materialized in HBM; casting it to bf16 halves that traffic for now.
    gathered = jnp.take(x, indices.reshape(-1), axis=1).reshape(B, N_in, SC)
    gathered = gathered.astype(jnp.bfloat16)
    wt = weight.T.astype(jnp.bfloat16)                    # (SC, C_out)
    b2 = bias.reshape(1, C_out).astype(jnp.float32)       # (1, C_out)
    # TODO(synk): exploit down_transform sparsity (~2 nnz per row) with scalar-prefetched
    # (col, weight) pairs + a VPU gather-add instead of a dense pool matmul.
    dT = down_transform_dense.T.astype(jnp.bfloat16)      # (N_in, N_out)

    def kernel(g_ref, wt_ref, b_ref, dT_ref, o_ref):
        k = pl.program_id(1)

        @pl.when(k == 0)
        def _init():
            o_ref[...] = jnp.zeros_like(o_ref)

        w = wt_ref[...]          # (SC, C_out)        bf16
        brow = b_ref[...]        # (1, C_out)         f32
        d_t = dT_ref[...]        # (n_in_tile, N_out) bf16 == D[:, tile].T

        for b in range(batch_tile):                       # static unroll, bt is small
            g = g_ref[b]                                  # (n_in_tile, SC) bf16
            y = jnp.dot(g, w, preferred_element_type=jnp.float32) + brow
            # ELU (alpha = 1), matching F.elu. The negative branch is an exact,
            # cancellation-free expm1 built from EUP-native ops:
            #   expm1(v) = 2*t / (1 - t),  t = tanh(v / 2)
            # The min() clamp also avoids inf intermediates for large positive y.
            t = jnp.tanh(0.5 * jnp.minimum(y, 0.0))
            y = jnp.where(y > 0.0, y, 2.0 * t / (1.0 - t))
            # Pool contribution of this N_in tile:
            #   contrib[r, c] = sum_n D[r, n] * y[n, c]   (lhs supplied transposed)
            contrib = jax.lax.dot_general(
                d_t, y.astype(jnp.bfloat16),
                dimension_numbers=(((0,), (0,)), ((), ())),
                preferred_element_type=jnp.float32)       # (N_out, C_out)
            lo = b * C_out
            o_ref[0, :, lo:lo + C_out] = o_ref[0, :, lo:lo + C_out] + contrib

    flops = 2 * B * N_in * SC * C_out + 2 * B * N_out * N_in * C_out
    transcendentals = B * N_in * C_out
    bytes_accessed = (gathered.size * 2 + wt.size * 2 + dT.size * 2
                      + b2.size * 4 + B * N_out * C_out * 4)

    out_slab = pl.pallas_call(
        kernel,
        out_shape=jax.ShapeDtypeStruct((num_g, N_out, batch_tile * C_out), jnp.float32),
        grid_spec=pltpu.PrefetchScalarGridSpec(
            num_scalar_prefetch=0,
            grid=(num_g, num_k),                           # reduction (N_in) axis innermost
            in_specs=[
                pl.BlockSpec((batch_tile, n_in_tile, SC), lambda g, k: (g, k, 0)),
                pl.BlockSpec((SC, C_out), lambda g, k: (0, 0)),
                pl.BlockSpec((1, C_out), lambda g, k: (0, 0)),
                pl.BlockSpec((n_in_tile, N_out), lambda g, k: (k, 0)),
            ],
            out_specs=pl.BlockSpec((1, N_out, batch_tile * C_out),
                                   lambda g, k: (g, 0, 0)),
        ),
        compiler_params=pltpu.CompilerParams(
            dimension_semantics=("parallel", "arbitrary"),
            vmem_limit_bytes=48 * 1024 * 1024),
        cost_estimate=pl.CostEstimate(flops=flops,
                                      transcendentals=transcendentals,
                                      bytes_accessed=bytes_accessed),
    )(gathered, wt, b2, dT)

    # Un-fold the lane-packed batch: (num_g, N_out, bt*C_out) -> (B, N_out, C_out).
    out = out_slab.reshape(num_g, N_out, batch_tile, C_out)
    out = jnp.transpose(out, (0, 2, 1, 3)).reshape(B, N_out, C_out)
    return out


def reference(x, indices, weight, bias, down_transform_dense):
    B, N_in, C_in = x.shape
    _, S = indices.shape
    g = jnp.take(x, indices.reshape(-1), axis=1).reshape(B, N_in, S * C_in)
    y = jnp.einsum("bnk,ok->bno", g, weight) + bias
    y = jnp.where(y > 0.0, y, jnp.expm1(y))
    return jnp.einsum("rn,bno->bro", down_transform_dense, y)


if __name__ == "__main__":
    # Small shapes consistent with the module's forward.
    B, N_in, C_in, S, C_out = 2, 32, 4, 8, 32
    N_out = N_in // 2

    key = jax.random.PRNGKey(0)
    kx, kw = jax.random.split(key)

    x = jax.random.normal(kx, (B, N_in, C_in), dtype=jnp.float32)

    # Deterministic spiral indices: indices[n, s] = (n + s) % N_in
    indices = ((jnp.arange(N_in)[:, None] + jnp.arange(S)[None, :]) % N_in).astype(jnp.int32)

    # SpiralConv.layer = nn.Linear(C_in*S, C_out), xavier_uniform weight, zero bias.
    fan_in, fan_out = C_in * S, C_out
    limit = float(np.sqrt(6.0 / (fan_in + fan_out)))
    weight = jax.random.uniform(kw, (C_out, C_in * S), dtype=jnp.float32,
                                minval=-limit, maxval=limit)
    bias = jnp.zeros((C_out,), dtype=jnp.float32)

    # Deterministic sparse down-transform: row r averages input vertices 2r, 2r+1.
    dt = np.zeros((N_out, N_in), dtype=np.float32)
    for r in range(N_out):
        dt[r, 2 * r] = 0.5
        dt[r, 2 * r + 1] = 0.5
    down_transform_dense = jnp.asarray(dt)

    out = spiral_enblock(x, indices, weight, bias, down_transform_dense,
                         batch_tile=2, n_in_tile=16)
    out = jax.block_until_ready(out)

    ref = reference(x, indices, weight, bias, down_transform_dense)
    assert out.shape == (B, N_out, C_out)
    # bf16 MXU operands (f32 accumulation) -> compare against the f32 reference
    # at bf16-appropriate tolerance.
    np.testing.assert_allclose(np.asarray(out), np.asarray(ref), rtol=2e-2, atol=2e-2)

    print("KERNEL_OK")
</pallas_src>

<mosaic_0001>
module attributes {stable_mosaic.version = 11 : i64} {
  func.func @kernel(%arg0: i32, %arg1: i32, %arg2: memref<2x16x32xbf16, #tpu.memory_space<vmem>>, %arg3: memref<32x32xbf16, #tpu.memory_space<vmem>>, %arg4: memref<1x32xf32, #tpu.memory_space<vmem>>, %arg5: memref<16x16xbf16, #tpu.memory_space<vmem>>, %arg6: memref<1x16x64xf32, #tpu.memory_space<vmem>>) attributes {dimension_semantics = [#tpu.dimension_semantics<parallel>, #tpu.dimension_semantics<arbitrary>], iteration_bounds = array<i64: 1, 2>, scalar_prefetch = 0 : i64, scratch_operands = 0 : i64, tpu.core_type = #tpu.core_type<tc>, window_params = [{transform_indices = @transform_0, window_bounds = array<i64: 2, 16, 32>}, {pipeline_mode = #tpu.pipeline_mode<synchronous>, transform_indices = @transform_1, window_bounds = array<i64: 32, 32>}, {pipeline_mode = #tpu.pipeline_mode<synchronous>, transform_indices = @transform_2, window_bounds = array<i64: 1, 32>}, {transform_indices = @transform_3, window_bounds = array<i64: 16, 16>}, {transform_indices = @transform_4, window_bounds = array<i64: 1, 16, 64>}]} {
    %c0_i32 = arith.constant 0 : i32
    %0 = arith.cmpi eq, %arg1, %c0_i32 : i32
    %1 = arith.extui %0 : i1 to i32
    %c0_i32_0 = arith.constant 0 : i32
    %2 = arith.cmpi ne, %1, %c0_i32_0 : i32
    scf.if %2 {
      %cst_35 = arith.constant 0.000000e+00 : f32
      %58 = vector.broadcast %cst_35 : f32 to vector<1x16x64xf32>
      %c0_36 = arith.constant 0 : index
      %c0_37 = arith.constant 0 : index
      %c0_38 = arith.constant 0 : index
      %59 = vector.load %arg6[%c0_36, %c0_37, %c0_38] : memref<1x16x64xf32, #tpu.memory_space<vmem>>, vector<1x16x64xf32>
      tpu.vector_store %arg6[%c0_36, %c0_37, %c0_38], %58 {strides = array<i32>} : memref<1x16x64xf32, #tpu.memory_space<vmem>>, vector<1x16x64xf32>,
    } else {
    }
    %c0 = arith.constant 0 : index
    %c0_1 = arith.constant 0 : index
    %3 = vector.load %arg3[%c0, %c0_1] : memref<32x32xbf16, #tpu.memory_space<vmem>>, vector<32x32xbf16>
    %c0_2 = arith.constant 0 : index
    %c0_3 = arith.constant 0 : index
    %4 = vector.load %arg4[%c0_2, %c0_3] : memref<1x32xf32, #tpu.memory_space<vmem>>, vector<1x32xf32>
    %c0_4 = arith.constant 0 : index
    %c0_5 = arith.constant 0 : index
    %5 = vector.load %arg5[%c0_4, %c0_5] : memref<16x16xbf16, #tpu.memory_space<vmem>>, vector<16x16xbf16>
    %c0_6 = arith.constant 0 : index
    %c0_7 = arith.constant 0 : index
    %c0_8 = arith.constant 0 : index
    %6 = vector.load %arg2[%c0_6, %c0_7, %c0_8] : memref<2x16x32xbf16, #tpu.memory_space<vmem>>, vector<1x16x32xbf16>
    %7 = vector.shape_cast %6 : vector<1x16x32xbf16> to vector<16x32xbf16>
    %cst = arith.constant dense<0.000000e+00> : vector<16x32xf32>
    %8 = tpu.matmul %7, %3, %cst {dimension_numbers = #tpu.dot_dimension_numbers<[1], [0], [0], [1], [0, 0, 1, 1], [], []>} : vector<16x32xbf16>, vector<32x32xbf16>, vector<16x32xf32> -> vector<16x32xf32>
    %9 = vector.broadcast %4 : vector<1x32xf32> to vector<16x32xf32>
    %10 = arith.addf %8, %9 : vector<16x32xf32>
    %cst_9 = arith.constant 0.000000e+00 : f32
    %11 = vector.broadcast %cst_9 : f32 to vector<16x32xf32>
    %12 = arith.minimumf %10, %11 : vector<16x32xf32>
    %cst_10 = arith.constant 5.000000e-01 : f32
    %13 = vector.broadcast %cst_10 : f32 to vector<16x32xf32>
    %14 = arith.mulf %13, %12 : vector<16x32xf32>
    %15 = math.tanh %14 : vector<16x32xf32>
    %cst_11 = arith.constant 0.000000e+00 : f32
    %16 = vector.broadcast %cst_11 : f32 to vector<16x32xf32>
    %17 = arith.cmpf ogt, %10, %16 : vector<16x32xf32>
    %cst_12 = arith.constant 2.000000e+00 : f32
    %18 = vector.broadcast %cst_12 : f32 to vector<16x32xf32>
    %19 = arith.mulf %18, %15 : vector<16x32xf32>
    %cst_13 = arith.constant 1.000000e+00 : f32
    %20 = vector.broadcast %cst_13 : f32 to vector<16x32xf32>
    %21 = arith.subf %20, %15 : vector<16x32xf32>
    %22 = arith.divf %19, %21 : vector<16x32xf32>
    %23 = arith.select %17, %10, %22 : vector<16x32xi1>, vector<16x32xf32>
    %24 = arith.truncf %23 : vector<16x32xf32> to vector<16x32xbf16>
    %cst_14 = arith.constant dense<0.000000e+00> : vector<16x32xf32>
    %25 = tpu.matmul %5, %24, %cst_14 {dimension_numbers = #tpu.dot_dimension_numbers<[0], [0], [1], [1], [0, 1, 1, 1], [], []>} : vector<16x16xbf16>, vector<16x32xbf16>, vector<16x32xf32> -> vector<16x32xf32>
    %c0_15 = arith.constant 0 : index
    %c0_16 = arith.constant 0 : index
    %c0_17 = arith.constant 0 : index
    %26 = vector.load %arg6[%c0_15, %c0_16, %c0_17] : memref<1x16x64xf32, #tpu.memory_space<vmem>>, vector<1x16x32xf32>
    %27 = vector.shape_cast %26 : vector<1x16x32xf32> to vector<16x32xf32>
    %28 = arith.addf %27, %25 : vector<16x32xf32>
    %c0_18 = arith.constant 0 : index
    %c0_19 = arith.constant 0 : index
    %c0_20 = arith.constant 0 : index
    %29 = vector.load %arg6[%c0_18, %c0_19, %c0_20] : memref<1x16x64xf32, #tpu.memory_space<vmem>>, vector<1x16x32xf32>
    %30 = vector.shape_cast %29 : vector<1x16x32xf32> to vector<16x32xf32>
    %31 = vector.shape_cast %28 : vector<16x32xf32> to vector<1x16x32xf32>
    tpu.vector_store %arg6[%c0_18, %c0_19, %c0_20], %31 {strides = array<i32>} : memref<1x16x64xf32, #tpu.memory_space<vmem>>, vector<1x16x32xf32>,
    %c1 = arith.constant 1 : index
    %c0_21 = arith.constant 0 : index
    %c0_22 = arith.constant 0 : index
    %32 = vector.load %arg2[%c1, %c0_21, %c0_22] : memref<2x16x32xbf16, #tpu.memory_space<vmem>>, vector<1x16x32xbf16>
    %33 = vector.shape_cast %32 : vector<1x16x32xbf16> to vector<16x32xbf16>
    %cst_23 = arith.constant dense<0.000000e+00> : vector<16x32xf32>
    %34 = tpu.matmul %33, %3, %cst_23 {dimension_numbers = #tpu.dot_dimension_numbers<[1], [0], [0], [1], [0, 0, 1, 1], [], []>} : vector<16x32xbf16>, vector<32x32xbf16>, vector<16x32xf32> -> vector<16x32xf32>
    %35 = vector.broadcast %4 : vector<1x32xf32> to vector<16x32xf32>
    %36 = arith.addf %34, %35 : vector<16x32xf32>
    %cst_24 = arith.constant 0.000000e+00 : f32
    %37 = vector.broadcast %cst_24 : f32 to vector<16x32xf32>
    %38 = arith.minimumf %36, %37 : vector<16x32xf32>
    %cst_25 = arith.constant 5.000000e-01 : f32
    %39 = vector.broadcast %cst_25 : f32 to vector<16x32xf32>
    %40 = arith.mulf %39, %38 : vector<16x32xf32>
    %41 = math.tanh %40 : vector<16x32xf32>
    %cst_26 = arith.constant 0.000000e+00 : f32
    %42 = vector.broadcast %cst_26 : f32 to vector<16x32xf32>
    %43 = arith.cmpf ogt, %36, %42 : vector<16x32xf32>
    %cst_27 = arith.constant 2.000000e+00 : f32
    %44 = vector.broadcast %cst_27 : f32 to vector<16x32xf32>
    %45 = arith.mulf %44, %41 : vector<16x32xf32>
    %cst_28 = arith.constant 1.000000e+00 : f32
    %46 = vector.broadcast %cst_28 : f32 to vector<16x32xf32>
    %47 = arith.subf %46, %41 : vector<16x32xf32>
    %48 = arith.divf %45, %47 : vector<16x32xf32>
    %49 = arith.select %43, %36, %48 : vector<16x32xi1>, vector<16x32xf32>
    %50 = arith.truncf %49 : vector<16x32xf32> to vector<16x32xbf16>
    %cst_29 = arith.constant dense<0.000000e+00> : vector<16x32xf32>
    %51 = tpu.matmul %5, %50, %cst_29 {dimension_numbers = #tpu.dot_dimension_numbers<[0], [0], [1], [1], [0, 1, 1, 1], [], []>} : vector<16x16xbf16>, vector<16x32xbf16>, vector<16x32xf32> -> vector<16x32xf32>
    %c0_30 = arith.constant 0 : index
    %c0_31 = arith.constant 0 : index
    %c32 = arith.constant 32 : index
    %52 = vector.load %arg6[%c0_30, %c0_31, %c32] : memref<1x16x64xf32, #tpu.memory_space<vmem>>, vector<1x16x32xf32>
    %53 = vector.shape_cast %52 : vector<1x16x32xf32> to vector<16x32xf32>
    %54 = arith.addf %53, %51 : vector<16x32xf32>
    %c0_32 = arith.constant 0 : index
    %c0_33 = arith.constant 0 : index
    %c32_34 = arith.constant 32 : index
    %55 = vector.load %arg6[%c0_32, %c0_33, %c32_34] : memref<1x16x64xf32, #tpu.memory_space<vmem>>, vector<1x16x32xf32>
    %56 = vector.shape_cast %55 : vector<1x16x32xf32> to vector<16x32xf32>
    %57 = vector.shape_cast %54 : vector<16x32xf32> to vector<1x16x32xf32>
    tpu.vector_store %arg6[%c0_32, %c0_33, %c32_34], %57 {strides = array<i32>} : memref<1x16x64xf32, #tpu.memory_space<vmem>>, vector<1x16x32xf32>,
    return
  }
  func.func @transform_0(%arg0: i32, %arg1: i32) -> (i32, i32, i32) {
    %c0_i32 = arith.constant 0 : i32
    %c0_i32_0 = arith.constant 0 : i32
    return %arg0, %arg1, %c0_i32 : i32, i32, i32
  }
  func.func @transform_1(%arg0: i32, %arg1: i32) -> (i32, i32) {
    %c0_i32 = arith.constant 0 : i32
    %c0_i32_0 = arith.constant 0 : i32
    %c0_i32_1 = arith.constant 0 : i32
    return %c0_i32, %c0_i32_0 : i32, i32
  }
  func.func @transform_2(%arg0: i32, %arg1: i32) -> (i32, i32) {
    %c0_i32 = arith.constant 0 : i32
    %c0_i32_0 = arith.constant 0 : i32
    %c0_i32_1 = arith.constant 0 : i32
    return %c0_i32, %c0_i32_0 : i32, i32
  }
  func.func @transform_3(%arg0: i32, %arg1: i32) -> (i32, i32) {
    %c0_i32 = arith.constant 0 : i32
    %c0_i32_0 = arith.constant 0 : i32
    return %arg1, %c0_i32 : i32, i32
  }
  func.func @transform_4(%arg0: i32, %arg1: i32) -> (i32, i32, i32) {
    %c0_i32 = arith.constant 0 : i32
    %c0_i32_0 = arith.constant 0 : i32
    %c0_i32_1 = arith.constant 0 : i32
    return %arg0, %c0_i32, %c0_i32_0 : i32, i32, i32
  }
}

</mosaic_0001>

<bundles_post_ra>
// kernel: tpu_custom_call.1
= control target key start
LH: loop header
LB: loop body
LE: loop exit
PB: predicated region body
PF: predicated region fallthrough
CT: control target
= control target key end

     0   :  { %9 = vsyncpa [#allocation3], 0  ;;  %s1111_s0 = inlined_call_operand.hbm [shape: bf16[2,32,32], index: 0, kind: input, shape index: {}]   ;;  %s1112_s1 = inlined_call_operand.vmem [shape: bf16[32,32], index: 1, kind: input, shape index: {}]   ;;  %s1113_s2 = inlined_call_operand.vmem [shape: f32[1,32], index: 2, kind: input, shape index: {}]   ;;  %s1114_s3 = inlined_call_operand.vmem [shape: bf16[32,16], index: 3, kind: input, shape index: {}]   ;;  %s1115_s4 = inlined_call_operand.hbm [shape: f32[1,16,64], index: 4, kind: output, shape index: {}]  }
   0x1   :  { %11 = vsyncpa [#allocation3 + $0x1], 0 }
   0x2   :  { %12 = vsyncpa [#allocation4], 0  ;;  %s953_s15 = smov 0   ;;  %s955_s16 = smov 0  }
   0x3   :  { %s957_s17 = smov 0   ;;  %s959_s18 = smov 0  }
   0x4   :  { %s961_s19 = smov 0   ;;  %s963_s20 = smov 0  }
   0x5 LB: > { %s667_s21 = sadd.s32 4294967295, %s913_s20   ;;  %s27_s22 = sadd.s32 1, %s909_s19  ;;  %s913_s20 = sphi %s963_s20, %s18_s20   ;;  %s909_s19 = sphi %s961_s19, %s1123_s19   ;;  %s905_s18 = sphi %s959_s18, %s1122_s18   ;;  %s901_s17 = sphi %s957_s17, %s1121_s17   ;;  %s897_s16 = sphi %s955_s16, %s1120_s16   ;;  %s893_s15 = sphi %s953_s15, %s1119_s15  }
   0x6   : > { %p28_p0 = scmp.ge.s32.totalorder %s27_s22, 2  ;;  %s39_s23 = sadd.s32 1, %s901_s17 }
   0x7   : > { %p46_p1 = scmp.ne.s32.totalorder %s901_s17, %s897_s16  ;;  %p47_p2 = scmp.eq.s32.totalorder %s913_s20, 0 }
   0x8   : > { %s1125_s22 = smov (%p28_p0, %s27_s22), 0  ;;  %p52_p4 = scmp.ne.s32.totalorder %s897_s16, %s893_s15 }
   0x9   : > { %p989_p3 = por %p47_p2, %p46_p1  ;;  %s35_s25 = ssub.s32 %s909_s19, %s1125_s22 }
   0xa   : > { %p53_p5 = scmp.eq.s32.totalorder %s667_s21, 0  ;;  %p37_p6 = scmp.eq.s32.totalorder %s35_s25, 0 }
   0xb   : > { %p669_p8 = scmp.ge.s32.totalorder %s913_s20, 2 }
   0xc   : > { %p998_p7 = por %p53_p5, %p52_p4 }
   0xd   : > { %s1003_s27 = scalar_select %p37_p6, %s901_s17, %s39_s23  }
   0xe   : > { %172 = sbr.rel (%p669_p8) target bundleno = 34 (0x22), region = 24 }
  0x15   : > { %s176_s28 = sand.u32 1, %s901_s17   ;;  %s696_s29 = sshll.u32 %s909_s19, 7 }
  0x16   : > { %s670_s30 = sshll.u32 %s176_s28, 4  ;;  %s189_s7 = scalar_lea.hbm %s1111_s0, %s696_s29 }
  0x17   : > { %s735_s8 = scalar_select %p989_p3, [#allocation0], [#allocation8] }
  0x18   : > { %s180_s9 = scalar_lea.vmem [#allocation2], %s670_s30  ;;  %s915_s12 = smov 256  }
  0x19   : > { %s202_s10 = sshll.u32 %s180_s9, 4  ;;  %s194_s11 = sld [smem:[%s735_s8]]   ;;  %s203_s10 = int_to_ptr.vmem [resolvable:$true] %s202_s10 }
  0x1a   : > { %736 = sst [smem:[#allocation7]] (%p989_p3), %s915_s12  ;;  %s916_s13 = smov 128  }
  0x1b   : > { %737 = sst [smem:[#allocation7 + $0x1]] (%p989_p3), %s916_s13  ;;  %s917_s14 = smov 2  }
  0x1c   : > { %738 = sst [smem:[#allocation7 + $0x2]] (%p989_p3), %s917_s14  ;;  %s918_s15 = smov 64  }
  0x1d   : > { %739 = sst [smem:[#allocation7 + $0x3]] (%p989_p3), %s918_s15  ;;  %s919_s25 = smov 4  }
  0x1e   : > { %740 = sst [smem:[#allocation7 + $0x4]] (%p989_p3), %s918_s15  ;;  %s177_s30 = scalar_lea.sflag [#allocation3], %s176_s28 }
  0x1f   : > { %s673_s23 = sshll.u32 %s194_s11, 26  ;;  %741 = sst [smem:[#allocation7 + $0x5]] (%p989_p3), %s919_s25 }
  0x20   : > { %s674_s29 = sadd.s32 134217728, %s673_s23  ;;  %s920_s5 = smov [#allocation6]  }
  0x21   : > { %742 = dma.general (%p989_p3), %s189_s7, 256, %s203_s10, %s177_s30, %s920_s5, [#allocation7], %s674_s29, 0  }
  0x22 PF: > { %p675_p9 = scmp.ge.s32.totalorder %s913_s20, 1  ;;  %p232_p10 = scmp.lt.s32.totalorder %s913_s20, 3 }
  0x24   : > { %p233_p11 = pnand %p675_p9, %p232_p10 }
  0x25   : > { %s238_s6 = sand.u32 (!%p233_p11), 1, %s897_s16  }
  0x26   : > { %236 = sbr.rel (%p233_p11) target bundleno = 923 (0x39b), region = 36  ;;  %s1030_s8 = sshll.u32 (!%p233_p11), %s238_s6, 4 }
  0x27   : > { %s239_s9 = scalar_lea.sflag (!%p233_p11), [#allocation3], %s238_s6  ;;  %s242_s11 = scalar_lea.vmem (!%p233_p11), [#allocation2], %s1030_s8 }
  0x2d   : > { %884 = dma.done.wait (%p998_p7), %s239_s9, 256  }
  0x2e   : > { %886 = vsyncadd (%p998_p7), %s239_s9, 4294967040  ;;  %s677_s24 = sshll.u32 %s905_s18, 1  ;;  %p679_p13 = scmp.ne.s32.totalorder %s905_s18, 0 }
  0x2f   : > { %p270_p12 = scmp.lt.s32.totalorder %s677_s24, 3  ;;  %vm280_vm0 = vcmask (!%p679_p13), 523264   ;;  %v921_v0 = vmov (!%p679_p13), 0.0  }
  0x30   : > { %279 = sbr.rel (%p679_p13) target bundleno = 55 (0x37), region = 44  ;;  %281 = vst.msk [vmem:[#allocation5] sm:$0xff] (!%p679_p13), %vm280_vm0, %v921_v0  ;;  %282 = vst.msk [vmem:[#allocation5 + $0x8] sm:$0xff] (!%p679_p13), %vm280_vm0, %v921_v0 }
  0x31   : > { %s1127_s24 = smov (!%p270_p12, %s677_s24), 3 }
  0x32   : > { %s678_s28 = sshll.u32 %s1127_s24, 2 }
  0x33   : > { %s273_s12 = scalar_lea.vmem %s1114_s3, %s678_s28 }
  0x37 PF: > { %v812_v1 = vld [vmem:[%s1112_s1] sm:$0xff]   ;;  %v922_v2 = vmov 0.0   ;;  %v813_v3 = vld [vmem:[%s1112_s1 + $0x8] sm:$0xff]   ;;  %vm923_vm1 = vmmov 0   ;;  %vm315_vm2 = vcmask 261120   ;;  %vm401_vm5 = vcmask 130048  }
  0x38   : > { %707 = vmatprep.subr.bf16.mxu0 %v922_v2  ;;  %715 = vmatprep.subr.bf16.mxu1 %v922_v2  ;;  %v815_v4 = vld [vmem:[%s273_s12] sm:$0xff]   ;;  %v816_v31 = vld [vmem:[%s242_s11 + $0x8] sm:$0xff]   ;;  %s924_s25 = smov 32   ;;  %s925_s29 = smov [#allocation5]   ;;  %vm576_vm8 = vcmask 523520  }
  0x39   : > { %708 = vmatpush3.bf16.msra.mxu0 %v812_v1  ;;  %711 = vmatprep.mubr.msk.bf16.mxu0 %vm923_vm1, %v922_v2  ;;  %v814_v5 = vld [vmem:[%s242_s11] sm:$0xff]   ;;  %v447_v34 = vld [vmem:[#allocation5 + $0x8] sm:$0xff]  ;;  %s588_s30 = sshll.u32 %s925_s29, 4  ;;  %p1067_p0 = scmp.eq.s32.totalorder %s667_s21, 1  ;;  %s589_s30 = int_to_ptr.vmem [resolvable:$true] %s588_s30 }
  0x3a   : > { %709 = vmatprep.subr.bf16.mxu0 %v922_v2  ;;  %717 = vmatprep.mubr.msk.bf16.mxu1 %vm923_vm1, %v922_v2  ;;  %v680_v6 = vld [vmem:[%s1113_s2] ss:$0 sm:$0xff]  ;;  %s833_s6 = scalar_lea.vmem %s589_s30, 256  ;;  %p840_p4 = scmp.lt.s32.totalorder %s589_s30, %s589_s30 }
  0x3b   : > { %385 = vxpose.xlu0.c.b16.start.end [1/1] (short) (narrow) %v815_v4, 16  ;;  %v446_v32 = vld [vmem:[#allocation5] sm:$0xff]  ;;  %p834_p1 = scmp.ne.s32.totalorder %s589_s30, %s833_s6  ;;  %p841_p5 = scmp.lt.s32.totalorder %s833_s6, %s833_s6 }
  0x3d   : > { %710 = vmatpush3.bf16.msra.mxu0 %v813_v3  ;;  %p835_p2 = pnand %p834_p1, %p1067_p0  ;;  %p842_p6 = por %p841_p5, %p840_p4 }
  0x3e   : > { %729 = vmatprep.subr.bf16.mxu0 %v922_v2 }
  0x3f   : > { %p836_p3 = pneg %p835_p2 }
  0x40   : > { %712 = vmatmul.mubr.msk.bf16.vlgmr.msra.gmra.mrb[0].mxu0 %vm315_vm2, %v814_v5 }
  0x41   : > { %731 = vmatprep.mubr.msk.bf16.mxu0 %vm923_vm1, %v922_v2  ;;  %p843_p7 = pnand %p842_p6, %p836_p3 }
  0xa1   : > { %v393_v30 = vpop.trf.xlu0 }
 0x113   : > { %v353_v7 = vpop.f32.mrb[0].mxu0 }
 0x114   : > { %v354_v8 = vadd.f32 %v680_v6, %v353_v7  ;;  %v713_v9 = vpop.f32.mrb[1].mxu0 }
 0x115   : > { %v356_v10 = vpop.f32.mrb[2].mxu0 }
 0x116   : > { %v360_v11 = vmin.f32 %v354_v8, 0.0  ;;  %v357_v12 = vadd.f32 %v680_v6, %v356_v10  ;;  %v714_v13 = vpop.f32.mrb[3].mxu0  ;;  %vm366_vm3 = vcmp.gt.f32.partialorder %v354_v8, 0.0 }
 0x118   : > { %v362_v14 = vmul.f32 0.5, %v360_v11  ;;  %v361_v15 = vmin.f32 %v357_v12, 0.0  ;;  %vm367_vm4 = vcmp.gt.f32.partialorder %v357_v12, 0.0 }
 0x11a   : > { %817 = vtanh.f32 %v362_v14  ;;  %v363_v16 = vmul.f32 0.5, %v361_v15 }
 0x11c   : > { %819 = vtanh.f32 %v363_v16 }
 0x124   : > { %v818_v17 = vpop.eup %817 }
 0x125   : > { %v370_v18 = vsub.f32 1.0, %v818_v17  ;;  %v368_v21 = vmul.f32 2.0, %v818_v17 }
 0x126   : > { %v820_v19 = vpop.eup %819 }
 0x127   : > { %821 = vrcp.f32 %v370_v18  ;;  %v371_v20 = vsub.f32 1.0, %v820_v19  ;;  %v369_v23 = vmul.f32 2.0, %v820_v19 }
 0x129   : > { %823 = vrcp.f32 %v371_v20 }
 0x131   : > { %v822_v22 = vpop.eup %821 }
 0x132   : > { %v373_v24 = vmul.f32 %v822_v22, %v368_v21 }
 0x133   : > { %v824_v25 = vpop.eup %823 }
 0x134   : > { %v375_v26 = vmul.f32 %v824_v25, %v369_v23  ;;  %v376_v27 = vsel %vm366_vm3, %v354_v8, %v373_v24 }
 0x136   : > { %v377_v28 = vsel %vm367_vm4, %v357_v12, %v375_v26 }
 0x137   : > { %v378_v29 = vpack.c.bf16 %v377_v28, %v376_v27 }
 0x139   : > { %716 = vmatpush3.bf16.msra.mxu1 %v378_v29 }
 0x13a   : > { %721 = vmatprep.subr.bf16.mxu1 %v922_v2 }
 0x13c   : > { %718 = vmatmul.mubr.msk.bf16.vlgmr.msra.gmra.mrb[0].mxu1 %vm401_vm5, %v393_v30 }
 0x13d   : > { %722 = vmatpush3.bf16.msra.mxu1 %v812_v1  ;;  %725 = vmatprep.mubr.msk.bf16.mxu1 %vm923_vm1, %v922_v2 }
 0x13e   : > { %723 = vmatprep.subr.bf16.mxu1 %v922_v2 }
 0x141   : > { %724 = vmatpush3.bf16.msra.mxu1 %v813_v3 }
 0x144   : > { %726 = vmatmul.mubr.msk.bf16.vlgmr.msra.gmra.mrb[4].mxu1 %vm315_vm2, %v816_v31 }
 0x20f   : > { %v439_v33 = vpop.f32.mrb[0].mxu1 }
 0x210   : > { %v448_v35 = vadd.f32 %v446_v32, %v439_v33  ;;  %v719_v36 = vpop.f32.mrb[1].mxu1 }
 0x211   : > { %v442_v37 = vpop.f32.mrb[2].mxu1 }
 0x212   : > { %450 = vst.msk [vmem:[#allocation5] sm:$0xff] %vm315_vm2, %v448_v35  ;;  %v449_v38 = vadd.f32 %v447_v34, %v442_v37  ;;  %v720_v39 = vpop.f32.mrb[3].mxu1 }
 0x214   : > { %451 = vst.msk [vmem:[#allocation5 + $0x8] sm:$0xff] %vm315_vm2, %v449_v38 }
 0x217   : > { %v497_v40 = vpop.f32.mrb[4].mxu1 }
 0x218   : > { %v498_v41 = vadd.f32 %v680_v6, %v497_v40  ;;  %v727_v42 = vpop.f32.mrb[5].mxu1 }
 0x219   : > { %v500_v43 = vpop.f32.mrb[6].mxu1  ;;  %v564_v3 = vld [vmem:[#allocation5] sm:$0xff] }
 0x21a   : > { %v504_v44 = vmin.f32 %v498_v41, 0.0  ;;  %v501_v45 = vadd.f32 %v680_v6, %v500_v43  ;;  %v728_v46 = vpop.f32.mrb[7].mxu1  ;;  %vm510_vm6 = vcmp.gt.f32.partialorder %v498_v41, 0.0 }
 0x21b   : > { %v565_v6 = vld [vmem:[#allocation5 + $0x8] sm:$0xff] }
 0x21c   : > { %v506_v47 = vmul.f32 0.5, %v504_v44  ;;  %v505_v48 = vmin.f32 %v501_v45, 0.0  ;;  %vm511_vm7 = vcmp.gt.f32.partialorder %v501_v45, 0.0 }
 0x21e   : > { %825 = vtanh.f32 %v506_v47  ;;  %v507_v49 = vmul.f32 0.5, %v505_v48 }
 0x220   : > { %827 = vtanh.f32 %v507_v49 }
 0x228   : > { %v826_v50 = vpop.eup %825 }
 0x229   : > { %v514_v51 = vsub.f32 1.0, %v826_v50  ;;  %v512_v54 = vmul.f32 2.0, %v826_v50 }
 0x22a   : > { %v828_v52 = vpop.eup %827 }
 0x22b   : > { %829 = vrcp.f32 %v514_v51  ;;  %v515_v53 = vsub.f32 1.0, %v828_v52  ;;  %v513_v57 = vmul.f32 2.0, %v828_v52 }
 0x22d   : > { %831 = vrcp.f32 %v515_v53 }
 0x235   : > { %v830_v55 = vpop.eup %829 }
 0x236   : > { %v517_v56 = vmul.f32 %v830_v55, %v512_v54 }
 0x237   : > { %v832_v58 = vpop.eup %831 }
 0x238   : > { %v519_v59 = vmul.f32 %v832_v58, %v513_v57  ;;  %v520_v60 = vsel %vm510_vm6, %v498_v41, %v517_v56 }
 0x23a   : > { %v521_v61 = vsel %vm511_vm7, %v501_v45, %v519_v59 }
 0x23b   : > { %v522_v62 = vpack.c.bf16 %v521_v61, %v520_v60 }
 0x23d   : > { %730 = vmatpush3.bf16.msra.mxu0 %v522_v62 }
 0x240   : > { %732 = vmatmul.mubr.msk.bf16.vlgmr.msra.gmra.mrb[4].mxu0 %vm401_vm5, %v393_v30 }
 0x313   : > { %v557_v63 = vpop.f32.mrb[4].mxu0 }
 0x314   : > { %568 = vrot.lane.b32.xlu0 %v557_v63, %s924_s25  ;;  %v733_v0 = vpop.f32.mrb[5].mxu0 }
 0x315   : > { %v560_v1 = vpop.f32.mrb[6].mxu0 }
 0x316   : > { %570 = vrot.lane.b32.xlu1 %v560_v1, %s924_s25  ;;  %v734_v2 = vpop.f32.mrb[7].mxu0 }
 0x386   : > { %v569_v4 = vpop.permute.xlu0 %568 }
 0x387   : > { %v574_v5 = vadd.f32 %v569_v4, %v564_v3 }
 0x388   : > { %v571_v7 = vpop.permute.xlu1 %570 }
 0x389   : > { %577 = vst.msk [vmem:[#allocation5] sm:$0xff] %vm576_vm8, %v574_v5  ;;  %v575_v8 = vadd.f32 %v571_v7, %v565_v6 }
 0x38b   : > { %578 = vst.msk [vmem:[#allocation5 + $0x8] sm:$0xff] %vm576_vm8, %v575_v8 }
 0x38c   : > { %846 = shalt.err (!%p843_p7)
}
 0x38d   : > { %s847_s9 = scalar_lea.hbm %s1115_s4, 256 }
 0x38e   : > { %p848_p8 = scmp.ne.s32.totalorder %s1115_s4, %s847_s9  ;;  %p853_p11 = scmp.lt.u32.totalorder %s847_s9, %s1115_s4 }
 0x390   : > { %p849_p9 = pnand %p848_p8, %p1067_p0 }
 0x392   : > { %p850_p10 = pneg %p849_p9 }
 0x394   : > { %p855_p12 = pnand %p853_p11, %p850_p10 }
 0x396   : > { %858 = shalt.err (!%p855_p12)
}
 0x397   : > { %s926_s10 = smov 128   ;;  %s927_s12 = smov 8  }
 0x398   : > { %745 = dma.vmem_to_hbm [thread:$0]  (%p1067_p0), %s589_s30, 256, %s1115_s4, [#allocation4], %s926_s10, %s926_s10, %s927_s12  }
 0x399   : > { %888 = dma.done.wait (%p1067_p0), [#allocation4], 256  }
 0x39a   : > { %890 = vsyncadd (%p1067_p0), [#allocation4], 4294967040 }
 0x39b PF: > { %s18_s20 = sadd.s32 1, %s913_s20   ;;  %s1119_s15 = smov %s897_s16 }
 0x39c   : > { %p15_p13 = scmp.ge.s32.totalorder %s18_s20, 4   ;;  %s1120_s16 = smov %s901_s17 }
 0x39d   : > { %s1121_s17 = smov %s1003_s27  ;;  %s1122_s18 = smov %s909_s19 }
 0x39e   : > { %s1123_s19 = smov %s1125_s22  ;;  %17 = sbr.rel (!%p15_p13) target bundleno = 5 (0x5), region = 87 }
 0x3a5   :  { %604 = vsyncpa [#allocation3], 1 }
 0x3a6   :  { %606 = vsyncpa [#allocation3 + $0x1], 1 }
 0x3a7   :  { %607 = vsyncpa [#allocation4], 1 }
 0x3a8   :  { %609 = vsyncpa [#allocation4 + $0x1], 1 }

</bundles_post_ra>
